<compile_context>
chip_gen: v6e
topology: v6e:2x2x1
jax: 0.10.0
libtpu: 0.0.40
codegen_flags: <defaults>
</compile_context>

<pallas_src>
import functools

import jax
import jax.numpy as jnp
from jax.experimental import pallas as pl
from jax.experimental.pallas import tpu as pltpu


def _round_up(x, m):
    return ((x + m - 1) // m) * m


def _mlp_kernel(
    x_ref,
    w1_ref, b1_ref,
    w2_ref, b2_ref,
    w3_ref, b3_ref,
    w4_ref, b4_ref,
    out_ref,
):
    """Fused 4-layer MLP (BN pre-folded into weights), bf16 MXU inputs, f32 accumulation."""
    h = x_ref[...].astype(jnp.bfloat16)

    # Layer 1: Linear(+folded BN) -> ReLU   (Dropout = identity in eval)
    h = jnp.dot(h, w1_ref[...], preferred_element_type=jnp.float32) + b1_ref[...]
    h = jnp.maximum(h, 0.0).astype(jnp.bfloat16)

    # Layer 2
    h = jnp.dot(h, w2_ref[...], preferred_element_type=jnp.float32) + b2_ref[...]
    h = jnp.maximum(h, 0.0).astype(jnp.bfloat16)

    # Layer 3 (output channels zero-padded to 128 lanes)
    h = jnp.dot(h, w3_ref[...], preferred_element_type=jnp.float32) + b3_ref[...]
    h = jnp.maximum(h, 0.0).astype(jnp.bfloat16)

    # Output layer: Linear only (logits), lane-dense padded width
    logits = jnp.dot(h, w4_ref[...], preferred_element_type=jnp.float32) + b4_ref[...]
    out_ref[...] = logits.astype(out_ref.dtype)


def fold_and_pack_params(params, num_classes, eps=1e-5):
    """One-time parameter prep: fold eval-mode BN into Linear, pad for lane density, cast to bf16."""

    def fold(w, b, g, be, m, v):
        scale = g / jnp.sqrt(v + eps)
        shift = be - m * scale
        return w * scale[None, :], b * scale + shift

    w1, b1 = fold(params["w1"], params["b1"], params["g1"], params["be1"], params["m1"], params["v1"])
    w2, b2 = fold(params["w2"], params["b2"], params["g2"], params["be2"], params["m2"], params["v2"])
    w3, b3 = fold(params["w3"], params["b3"], params["g3"], params["be3"], params["m3"], params["v3"])
    w4, b4 = params["w4"], params["b4"]

    # Pad hidden 64 -> 128 (lane-dense h3 / layer-4 LHS). Padded channels are exact zeros,
    # and the matching rows of w4 are zero, so results are unchanged.
    h3 = w3.shape[1]
    h3p = _round_up(h3, 128)
    w3 = jnp.pad(w3, ((0, 0), (0, h3p - h3)))
    b3 = jnp.pad(b3, (0, h3p - h3))

    # Pad output num_classes -> multiple of 128 (lane-dense stores, full MXU N width).
    cp = _round_up(num_classes, 128)
    w4 = jnp.pad(w4, ((0, h3p - h3), (0, cp - num_classes)))
    b4 = jnp.pad(b4, (0, cp - num_classes))

    to_w = lambda w: w.astype(jnp.bfloat16)
    to_b = lambda b: b.reshape(1, -1).astype(jnp.float32)
    return {
        "w1": to_w(w1), "b1": to_b(b1),
        "w2": to_w(w2), "b2": to_b(b2),
        "w3": to_w(w3), "b3": to_b(b3),
        "w4": to_w(w4), "b4": to_b(b4),
    }


@functools.partial(jax.jit, static_argnames=("num_classes", "max_tile_b"))
def tree_classifier_forward(x, kparams, num_classes, max_tile_b=512):
    """Batch-tiled fused MLP forward. Returns (B, num_classes) f32 logits."""
    B, F = x.shape
    cp = kparams["w4"].shape[1]  # padded (lane-dense) output width

    # Tile the batch; weights stay resident across grid steps. tile_b is either a multiple of 8
    # (512) or the full batch dim, satisfying the (8,128) block constraint either way.
    tile_b = min(max_tile_b, B)
    grid = (pl.cdiv(B, tile_b),)

    weight_ops = [kparams[k] for k in ("w1", "b1", "w2", "b2", "w3", "b3", "w4", "b4")]

    in_specs = [pl.BlockSpec((tile_b, F), lambda i: (i, 0))]
    in_specs += [pl.BlockSpec(op.shape, lambda i: (0, 0)) for op in weight_ops]

    out_padded = pl.pallas_call(
        _mlp_kernel,
        out_shape=jax.ShapeDtypeStruct((B, cp), jnp.float32),
        grid=grid,
        in_specs=in_specs,
        out_specs=pl.BlockSpec((tile_b, cp), lambda i: (i, 0)),
        compiler_params=pltpu.CompilerParams(
            dimension_semantics=("parallel",),  # shard batch tiles across TCs (v7x megacore)
        ),
    )(x, *weight_ops)

    return out_padded[:, :num_classes]


def init_params(key, input_size, num_classes):
    """PyTorch-style init: Linear weights/biases U(-1/sqrt(fan_in), ...), BN defaults."""
    dims = [input_size, 256, 128, 64, num_classes]
    keys = jax.random.split(key, 8)
    params = {}
    for i in range(4):
        fan_in = dims[i]
        bound = 1.0 / jnp.sqrt(fan_in)
        params[f"w{i+1}"] = jax.random.uniform(
            keys[2 * i], (dims[i], dims[i + 1]), jnp.float32, -bound, bound
        )
        params[f"b{i+1}"] = jax.random.uniform(
            keys[2 * i + 1], (dims[i + 1],), jnp.float32, -bound, bound
        )
    # BatchNorm eval-mode running stats (PyTorch defaults): gamma=1, beta=0, mean=0, var=1.
    for i, c in enumerate([256, 128, 64], start=1):
        params[f"g{i}"] = jnp.ones((c,), jnp.float32)
        params[f"be{i}"] = jnp.zeros((c,), jnp.float32)
        params[f"m{i}"] = jnp.zeros((c,), jnp.float32)
        params[f"v{i}"] = jnp.ones((c,), jnp.float32)
    return params


def reference_forward(x, params):
    """Pure-JAX f32 reference of the original module (eval mode)."""
    eps = 1e-5

    def bn(h, g, b, m, v):
        return (h - m) / jnp.sqrt(v + eps) * g + b

    h = x @ params["w1"] + params["b1"]
    h = jnp.maximum(bn(h, params["g1"], params["be1"], params["m1"], params["v1"]), 0.0)
    h = h @ params["w2"] + params["b2"]
    h = jnp.maximum(bn(h, params["g2"], params["be2"], params["m2"], params["v2"]), 0.0)
    h = h @ params["w3"] + params["b3"]
    h = jnp.maximum(bn(h, params["g3"], params["be3"], params["m3"], params["v3"]), 0.0)
    return h @ params["w4"] + params["b4"]


if __name__ == "__main__":
    key = jax.random.PRNGKey(0)
    kx, kx2, kp = jax.random.split(key, 3)

    input_size = 32
    num_classes = 4

    params = init_params(kp, input_size, num_classes)
    kparams = fold_and_pack_params(params, num_classes)  # one-time fold + pad + bf16 cast

    # Small sanity check (single tile).
    batch = 8
    x = jax.random.normal(kx, (batch, input_size), jnp.float32)
    out = jax.block_until_ready(tree_classifier_forward(x, kparams, num_classes))
    ref = reference_forward(x, params)
    assert out.shape == (batch, num_classes)
    # bf16 MXU inputs with f32 accumulation -> loosened tolerance vs. the f32 reference.
    assert jnp.allclose(out, ref, atol=2e-2, rtol=2e-2), "mismatch vs JAX reference (small batch)"

    # Multi-tile check: exercises the batch grid, resident weights, and pipelining.
    batch2 = 512
    x2 = jax.random.normal(kx2, (batch2, input_size), jnp.float32)
    out2 = jax.block_until_ready(
        tree_classifier_forward(x2, kparams, num_classes, max_tile_b=256)
    )
    ref2 = reference_forward(x2, params)
    assert out2.shape == (batch2, num_classes)
    assert jnp.allclose(out2, ref2, atol=2e-2, rtol=2e-2), "mismatch vs JAX reference (tiled batch)"

    print("KERNEL_OK")
</pallas_src>

<mosaic_0001>
module attributes {stable_mosaic.version = 11 : i64} {
  func.func @_mlp_kernel(%arg0: i32, %arg1: memref<8x32xf32, #tpu.memory_space<vmem>>, %arg2: memref<32x256xbf16, #tpu.memory_space<vmem>>, %arg3: memref<1x256xf32, #tpu.memory_space<vmem>>, %arg4: memref<256x128xbf16, #tpu.memory_space<vmem>>, %arg5: memref<1x128xf32, #tpu.memory_space<vmem>>, %arg6: memref<128x128xbf16, #tpu.memory_space<vmem>>, %arg7: memref<1x128xf32, #tpu.memory_space<vmem>>, %arg8: memref<128x128xbf16, #tpu.memory_space<vmem>>, %arg9: memref<1x128xf32, #tpu.memory_space<vmem>>, %arg10: memref<8x128xf32, #tpu.memory_space<vmem>>) attributes {dimension_semantics = [#tpu.dimension_semantics<parallel>], iteration_bounds = array<i64: 1>, scalar_prefetch = 0 : i64, scratch_operands = 0 : i64, tpu.core_type = #tpu.core_type<tc>, window_params = [{transform_indices = @transform_0, window_bounds = array<i64: 8, 32>}, {pipeline_mode = #tpu.pipeline_mode<synchronous>, transform_indices = @transform_1, window_bounds = array<i64: 32, 256>}, {pipeline_mode = #tpu.pipeline_mode<synchronous>, transform_indices = @transform_2, window_bounds = array<i64: 1, 256>}, {pipeline_mode = #tpu.pipeline_mode<synchronous>, transform_indices = @transform_3, window_bounds = array<i64: 256, 128>}, {pipeline_mode = #tpu.pipeline_mode<synchronous>, transform_indices = @transform_4, window_bounds = array<i64: 1, 128>}, {pipeline_mode = #tpu.pipeline_mode<synchronous>, transform_indices = @transform_5, window_bounds = array<i64: 128, 128>}, {pipeline_mode = #tpu.pipeline_mode<synchronous>, transform_indices = @transform_6, window_bounds = array<i64: 1, 128>}, {pipeline_mode = #tpu.pipeline_mode<synchronous>, transform_indices = @transform_7, window_bounds = array<i64: 128, 128>}, {pipeline_mode = #tpu.pipeline_mode<synchronous>, transform_indices = @transform_8, window_bounds = array<i64: 1, 128>}, {transform_indices = @transform_9, window_bounds = array<i64: 8, 128>}]} {
    %c0 = arith.constant 0 : index
    %c0_0 = arith.constant 0 : index
    %0 = vector.load %arg1[%c0, %c0_0] : memref<8x32xf32, #tpu.memory_space<vmem>>, vector<8x32xf32>
    %1 = arith.truncf %0 : vector<8x32xf32> to vector<8x32xbf16>
    %c0_1 = arith.constant 0 : index
    %c0_2 = arith.constant 0 : index
    %2 = vector.load %arg2[%c0_1, %c0_2] : memref<32x256xbf16, #tpu.memory_space<vmem>>, vector<32x256xbf16>
    %cst = arith.constant dense<0.000000e+00> : vector<8x256xf32>
    %3 = tpu.matmul %1, %2, %cst {dimension_numbers = #tpu.dot_dimension_numbers<[1], [0], [0], [1], [0, 0, 1, 1], [], []>} : vector<8x32xbf16>, vector<32x256xbf16>, vector<8x256xf32> -> vector<8x256xf32>
    %c0_3 = arith.constant 0 : index
    %c0_4 = arith.constant 0 : index
    %4 = vector.load %arg3[%c0_3, %c0_4] : memref<1x256xf32, #tpu.memory_space<vmem>>, vector<1x256xf32>
    %5 = vector.broadcast %4 : vector<1x256xf32> to vector<8x256xf32>
    %6 = arith.addf %3, %5 : vector<8x256xf32>
    %cst_5 = arith.constant 0.000000e+00 : f32
    %7 = vector.broadcast %cst_5 : f32 to vector<8x256xf32>
    %8 = arith.maximumf %6, %7 : vector<8x256xf32>
    %9 = arith.truncf %8 : vector<8x256xf32> to vector<8x256xbf16>
    %c0_6 = arith.constant 0 : index
    %c0_7 = arith.constant 0 : index
    %10 = vector.load %arg4[%c0_6, %c0_7] : memref<256x128xbf16, #tpu.memory_space<vmem>>, vector<256x128xbf16>
    %cst_8 = arith.constant dense<0.000000e+00> : vector<8x128xf32>
    %11 = tpu.matmul %9, %10, %cst_8 {dimension_numbers = #tpu.dot_dimension_numbers<[1], [0], [0], [1], [0, 0, 1, 1], [], []>} : vector<8x256xbf16>, vector<256x128xbf16>, vector<8x128xf32> -> vector<8x128xf32>
    %c0_9 = arith.constant 0 : index
    %c0_10 = arith.constant 0 : index
    %12 = vector.load %arg5[%c0_9, %c0_10] : memref<1x128xf32, #tpu.memory_space<vmem>>, vector<1x128xf32>
    %13 = vector.broadcast %12 : vector<1x128xf32> to vector<8x128xf32>
    %14 = arith.addf %11, %13 : vector<8x128xf32>
    %cst_11 = arith.constant 0.000000e+00 : f32
    %15 = vector.broadcast %cst_11 : f32 to vector<8x128xf32>
    %16 = arith.maximumf %14, %15 : vector<8x128xf32>
    %17 = arith.truncf %16 : vector<8x128xf32> to vector<8x128xbf16>
    %c0_12 = arith.constant 0 : index
    %c0_13 = arith.constant 0 : index
    %18 = vector.load %arg6[%c0_12, %c0_13] : memref<128x128xbf16, #tpu.memory_space<vmem>>, vector<128x128xbf16>
    %cst_14 = arith.constant dense<0.000000e+00> : vector<8x128xf32>
    %19 = tpu.matmul %17, %18, %cst_14 {dimension_numbers = #tpu.dot_dimension_numbers<[1], [0], [0], [1], [0, 0, 1, 1], [], []>} : vector<8x128xbf16>, vector<128x128xbf16>, vector<8x128xf32> -> vector<8x128xf32>
    %c0_15 = arith.constant 0 : index
    %c0_16 = arith.constant 0 : index
    %20 = vector.load %arg7[%c0_15, %c0_16] : memref<1x128xf32, #tpu.memory_space<vmem>>, vector<1x128xf32>
    %21 = vector.broadcast %20 : vector<1x128xf32> to vector<8x128xf32>
    %22 = arith.addf %19, %21 : vector<8x128xf32>
    %cst_17 = arith.constant 0.000000e+00 : f32
    %23 = vector.broadcast %cst_17 : f32 to vector<8x128xf32>
    %24 = arith.maximumf %22, %23 : vector<8x128xf32>
    %25 = arith.truncf %24 : vector<8x128xf32> to vector<8x128xbf16>
    %c0_18 = arith.constant 0 : index
    %c0_19 = arith.constant 0 : index
    %26 = vector.load %arg8[%c0_18, %c0_19] : memref<128x128xbf16, #tpu.memory_space<vmem>>, vector<128x128xbf16>
    %cst_20 = arith.constant dense<0.000000e+00> : vector<8x128xf32>
    %27 = tpu.matmul %25, %26, %cst_20 {dimension_numbers = #tpu.dot_dimension_numbers<[1], [0], [0], [1], [0, 0, 1, 1], [], []>} : vector<8x128xbf16>, vector<128x128xbf16>, vector<8x128xf32> -> vector<8x128xf32>
    %c0_21 = arith.constant 0 : index
    %c0_22 = arith.constant 0 : index
    %28 = vector.load %arg9[%c0_21, %c0_22] : memref<1x128xf32, #tpu.memory_space<vmem>>, vector<1x128xf32>
    %29 = vector.broadcast %28 : vector<1x128xf32> to vector<8x128xf32>
    %30 = arith.addf %27, %29 : vector<8x128xf32>
    %c0_23 = arith.constant 0 : index
    %c0_24 = arith.constant 0 : index
    %31 = vector.load %arg10[%c0_23, %c0_24] : memref<8x128xf32, #tpu.memory_space<vmem>>, vector<8x128xf32>
    tpu.vector_store %arg10[%c0_23, %c0_24], %30 {strides = array<i32>} : memref<8x128xf32, #tpu.memory_space<vmem>>, vector<8x128xf32>,
    return
  }
  func.func @transform_0(%arg0: i32) -> (i32, i32) {
    %c0_i32 = arith.constant 0 : i32
    %c0_i32_0 = arith.constant 0 : i32
    return %arg0, %c0_i32 : i32, i32
  }
  func.func @transform_1(%arg0: i32) -> (i32, i32) {
    %c0_i32 = arith.constant 0 : i32
    %c0_i32_0 = arith.constant 0 : i32
    %c0_i32_1 = arith.constant 0 : i32
    return %c0_i32, %c0_i32_0 : i32, i32
  }
  func.func @transform_2(%arg0: i32) -> (i32, i32) {
    %c0_i32 = arith.constant 0 : i32
    %c0_i32_0 = arith.constant 0 : i32
    %c0_i32_1 = arith.constant 0 : i32
    return %c0_i32, %c0_i32_0 : i32, i32
  }
  func.func @transform_3(%arg0: i32) -> (i32, i32) {
    %c0_i32 = arith.constant 0 : i32
    %c0_i32_0 = arith.constant 0 : i32
    %c0_i32_1 = arith.constant 0 : i32
    return %c0_i32, %c0_i32_0 : i32, i32
  }
  func.func @transform_4(%arg0: i32) -> (i32, i32) {
    %c0_i32 = arith.constant 0 : i32
    %c0_i32_0 = arith.constant 0 : i32
    %c0_i32_1 = arith.constant 0 : i32
    return %c0_i32, %c0_i32_0 : i32, i32
  }
  func.func @transform_5(%arg0: i32) -> (i32, i32) {
    %c0_i32 = arith.constant 0 : i32
    %c0_i32_0 = arith.constant 0 : i32
    %c0_i32_1 = arith.constant 0 : i32
    return %c0_i32, %c0_i32_0 : i32, i32
  }
  func.func @transform_6(%arg0: i32) -> (i32, i32) {
    %c0_i32 = arith.constant 0 : i32
    %c0_i32_0 = arith.constant 0 : i32
    %c0_i32_1 = arith.constant 0 : i32
    return %c0_i32, %c0_i32_0 : i32, i32
  }
  func.func @transform_7(%arg0: i32) -> (i32, i32) {
    %c0_i32 = arith.constant 0 : i32
    %c0_i32_0 = arith.constant 0 : i32
    %c0_i32_1 = arith.constant 0 : i32
    return %c0_i32, %c0_i32_0 : i32, i32
  }
  func.func @transform_8(%arg0: i32) -> (i32, i32) {
    %c0_i32 = arith.constant 0 : i32
    %c0_i32_0 = arith.constant 0 : i32
    %c0_i32_1 = arith.constant 0 : i32
    return %c0_i32, %c0_i32_0 : i32, i32
  }
  func.func @transform_9(%arg0: i32) -> (i32, i32) {
    %c0_i32 = arith.constant 0 : i32
    %c0_i32_0 = arith.constant 0 : i32
    return %arg0, %c0_i32 : i32, i32
  }
}

</mosaic_0001>

<bundles_post_ra>
// kernel: tree_classifier_forward.1
= control target key start
LH: loop header
LB: loop body
LE: loop exit
PB: predicated region body
PF: predicated region fallthrough
CT: control target
= control target key end

     0   :  { %14 = vsyncpa [#allocation3], 0  ;;  %s1027_s0 = inlined_call_operand.hbm [shape: f32[8,32], index: 0, kind: input, shape index: {}]   ;;  %s1028_s1 = inlined_call_operand.hbm [shape: bf16[32,256], index: 1, kind: input, shape index: {}]   ;;  %s1029_s2 = inlined_call_operand.hbm [shape: f32[1,256], index: 2, kind: input, shape index: {}]   ;;  %s1030_s3 = inlined_call_operand.hbm [shape: bf16[256,128], index: 3, kind: input, shape index: {}]   ;;  %s1031_s4 = inlined_call_operand.vmem [shape: f32[1,128], index: 4, kind: input, shape index: {}]   ;;  %s1032_s5 = inlined_call_operand.hbm [shape: bf16[128,128], index: 5, kind: input, shape index: {}]   ;;  %s1033_s6 = inlined_call_operand.vmem [shape: f32[1,128], index: 6, kind: input, shape index: {}]   ;;  %s1034_s7 = inlined_call_operand.hbm [shape: bf16[128,128], index: 7, kind: input, shape index: {}]   ;;  %s1035_s8 = inlined_call_operand.vmem [shape: f32[1,128], index: 8, kind: input, shape index: {}]   ;;  %s1036_s9 = inlined_call_operand.vmem [shape: f32[8,128], index: 9, kind: output, shape index: {}]  }
   0x1   :  { %15 = vsyncpa [#allocation5], 0 }
   0x2   :  { %16 = vsyncpa [#allocation8], 0 }
   0x3   :  { %17 = vsyncpa [#allocation11], 0  ;;  %s907_s30 = smov [#allocation4]  }
   0x4   :  { %s33_s10 = sshll.u32 %s907_s30, 4  ;;  %s34_s10 = int_to_ptr.vmem [resolvable:$true] %s33_s10 }
   0x5   :  { %s787_s11 = scalar_lea.vmem %s34_s10, 512  ;;  %p792_p1 = scmp.lt.s32.totalorder %s34_s10, %s34_s10 }
   0x6   :  { %p788_p0 = scmp.ne.s32.totalorder %s34_s10, %s787_s11  ;;  %p793_p2 = scmp.lt.s32.totalorder %s787_s11, %s787_s11 }
   0x8   :  { %p794_p3 = por %p793_p2, %p792_p1 }
   0xa   :  { %p795_p4 = pnand %p794_p3, %p788_p0 }
   0xc   :  { %798 = shalt.err (!%p795_p4)
}
   0xd   :  { %s908_s12 = smov 128   ;;  %s909_s13 = smov 8  }
   0xe   :  { %39 = dma.hbm_to_vmem [thread:$0]  %s1028_s1, 512, %s34_s10, [#allocation5], %s908_s12, %s908_s12, %s909_s13  }
   0xf   :  { %s910_s16 = smov [#allocation7]  }
  0x10   :  { %s55_s17 = sshll.u32 %s910_s16, 4  ;;  %s56_s17 = int_to_ptr.vmem [resolvable:$true] %s55_s17 }
  0x11   :  { %s807_s18 = scalar_lea.vmem %s56_s17, 2048  ;;  %p812_p6 = scmp.lt.s32.totalorder %s56_s17, %s56_s17 }
  0x12   :  { %p808_p5 = scmp.ne.s32.totalorder %s56_s17, %s807_s18  ;;  %p813_p7 = scmp.lt.s32.totalorder %s807_s18, %s807_s18 }
  0x14   :  { %p814_p8 = por %p813_p7, %p812_p6 }
  0x16   :  { %p815_p9 = pnand %p814_p8, %p808_p5 }
  0x18   :  { %818 = shalt.err (!%p815_p9)
}
  0x19   :  { %s911_s19 = smov 64   ;;  %s912_s20 = smov 4  }
  0x1a   :  { %61 = dma.hbm_to_vmem [thread:$0]  %s1030_s3, 2048, %s56_s17, [#allocation8], %s911_s19, %s911_s19, %s912_s20  }
  0x1b   :  { %s913_s1 = smov [#allocation2]   ;;  %s914_s24 = smov [#allocation6]  }
  0x1c   :  { %s24_s23 = sshll.u32 %s913_s1, 4  ;;  %s46_s25 = sshll.u32 %s914_s24, 4  ;;  %s25_s23 = int_to_ptr.vmem [resolvable:$true] %s24_s23  ;;  %s47_s25 = int_to_ptr.vmem [resolvable:$true] %s46_s25 }
  0x1d   :  { %s827_s26 = scalar_lea.vmem %s25_s23, 128  ;;  %p832_p11 = scmp.lt.s32.totalorder %s25_s23, %s25_s23 }
  0x1e   :  { %p828_p10 = scmp.ne.s32.totalorder %s25_s23, %s827_s26  ;;  %p833_p12 = scmp.lt.s32.totalorder %s827_s26, %s827_s26 }
  0x20   :  { %p834_p13 = por %p833_p12, %p832_p11 }
  0x22   :  { %p835_p0 = pnand %p834_p13, %p828_p10 }
  0x24   :  { %838 = shalt.err (!%p835_p0)
}
  0x25   :  { %27 = dma.hbm_to_vmem [thread:$0]  %s1027_s0, 128, %s25_s23, [#allocation3]  }
  0x26   :  { %s847_s29 = scalar_lea.vmem %s47_s25, 32  ;;  %p852_p2 = scmp.lt.s32.totalorder %s47_s25, %s47_s25 }
  0x27   :  { %p848_p1 = scmp.ne.s32.totalorder %s47_s25, %s847_s29  ;;  %p853_p3 = scmp.lt.s32.totalorder %s847_s29, %s847_s29 }
  0x29   :  { %p854_p4 = por %p853_p3, %p852_p2 }
  0x2b   :  { %p855_p5 = pnand %p854_p4, %p848_p1 }
  0x2d   :  { %858 = shalt.err (!%p855_p5)
}
  0x2e   :  { %49 = dma.hbm_to_vmem [thread:$0]  %s1029_s2, 32, %s47_s25, [#allocation5]  }
  0x2f   :  { %s915_s10 = smov [#allocation9]   ;;  %s916_s12 = smov [#allocation10]  }
  0x30   :  { %s69_s11 = sshll.u32 %s915_s10, 4  ;;  %s83_s13 = sshll.u32 %s916_s12, 4  ;;  %s70_s11 = int_to_ptr.vmem [resolvable:$true] %s69_s11  ;;  %s84_s13 = int_to_ptr.vmem [resolvable:$true] %s83_s13 }
  0x31   :  { %s867_s14 = scalar_lea.vmem %s70_s11, 1024  ;;  %p872_p7 = scmp.lt.s32.totalorder %s70_s11, %s70_s11 }
  0x32   :  { %p868_p6 = scmp.ne.s32.totalorder %s70_s11, %s867_s14  ;;  %p873_p8 = scmp.lt.s32.totalorder %s867_s14, %s867_s14 }
  0x34   :  { %p874_p9 = por %p873_p8, %p872_p7 }
  0x36   :  { %p875_p10 = pnand %p874_p9, %p868_p6 }
  0x38   :  { %878 = shalt.err (!%p875_p10)
}
  0x39   :  { %75 = dma.hbm_to_vmem [thread:$0]  %s1032_s5, 1024, %s70_s11, [#allocation8], %s911_s19, %s911_s19, %s912_s20  }
  0x3a   :  { %s887_s2 = scalar_lea.vmem %s84_s13, 1024  ;;  %p892_p12 = scmp.lt.s32.totalorder %s84_s13, %s84_s13 }
  0x3b   :  { %p888_p11 = scmp.ne.s32.totalorder %s84_s13, %s887_s2  ;;  %p893_p13 = scmp.lt.s32.totalorder %s887_s2, %s887_s2 }
  0x3d   :  { %p894_p0 = por %p893_p13, %p892_p12 }
  0x3f   :  { %p895_p1 = pnand %p894_p0, %p888_p11 }
  0x41   :  { %898 = shalt.err (!%p895_p1)
}
  0x42   :  { %89 = dma.hbm_to_vmem [thread:$0]  %s1034_s7, 1024, %s84_s13, [#allocation11], %s911_s19, %s911_s19, %s912_s20  }
  0x43   :  { %899 = dma.done.wait [#allocation3], 128  }
  0x44   :  { %900 = vsyncadd [#allocation3], 4294967168 }
  0x45   :  { %901 = dma.done.wait [#allocation5], 544  }
  0x46   :  { %902 = vsyncadd [#allocation5], 4294966752 }
  0x47   :  { %903 = dma.done.wait [#allocation8], 3072  }
  0x48   :  { %904 = vsyncadd [#allocation8], 4294964224 }
  0x49   :  { %905 = dma.done.wait [#allocation11], 1024  }
  0x4a   :  { %906 = vsyncadd [#allocation11], 4294966272  ;;  %v917_v0 = vmov 0   ;;  %v741_v1 = vld [vmem:[#allocation4 + $0x14] ss:$8 sps:$4 sm:$0xff]   ;;  %vm149_vm0 = vcmask 261120   ;;  %v119_v29 = vlaneseq }
  0x4b   :  { %185 = vmatprep.mubr.bf16.mxu0 %v917_v0  ;;  %v743_v2 = vld [vmem:[#allocation4 + $0x10] ss:$8 sps:$4 sm:$0xff]   ;;  %165 = vmatprep.subr.bf16.mxu0 %v741_v1  ;;  %v744_v3 = vld [vmem:[#allocation4 + $0x4] ss:$8 sps:$4 sm:$0xff]   ;;  %v746_v4 = vld [vmem:[#allocation4] ss:$8 sps:$4 sm:$0xff]  }
  0x4c   :  { %v111_v5 = vld [vmem:[#allocation2] sm:$0xff]  ;;  %166 = vmatpush1.bf16.msra.mxu0 %v743_v2  ;;  %v751_v11 = vld [vmem:[#allocation7 + $0x68] sm:$0xff]   ;;  %v753_v13 = vld [vmem:[#allocation7 + $0x60] sm:$0xff]   ;;  %v918_v24 = vmov 0.0   ;;  %v120_v30 = vshrl.u32 %v119_v29, 7  ;;  %vm919_vm1 = vmmov 0  }
  0x4d   :  { %v747_v6 = vld [vmem:[#allocation7 + $0x78] sm:$0xff]   ;;  %167 = vmatprep.subr.bf16.mxu0 %v744_v3  ;;  %v749_v8 = vld [vmem:[#allocation7 + $0x70] sm:$0xff]   ;;  %v112_v9 = vpack.c.bf16 %v111_v5, %v111_v5  ;;  %v752_v12 = vld [vmem:[#allocation7 + $0x28] sm:$0xff]  }
  0x4e   :  { %v748_v7 = vld [vmem:[#allocation7 + $0x38] sm:$0xff]   ;;  %648 = vmatprep.subr.bf16.mxu1 %v747_v6  ;;  %v750_v10 = vld [vmem:[#allocation7 + $0x30] sm:$0xff]   ;;  %v754_v14 = vld [vmem:[#allocation7 + $0x20] sm:$0xff]   ;;  %v121_v31 = vsub.s32 0, %v120_v30  ;;  %v125_v33 = vsub.s32 1, %v120_v30 }
  0x4f   :  { %649 = vmatpush3.bf16.msra.mxu1 %v748_v7  ;;  %v755_v15 = vld [vmem:[#allocation7 + $0x58] sm:$0xff]   ;;  %v757_v17 = vld [vmem:[#allocation7 + $0x50] sm:$0xff]   ;;  %v759_v19 = vld [vmem:[#allocation7 + $0x48] sm:$0xff]  }
  0x50   :  { %168 = vmatpush1.bf16.msra.mxu0 %v746_v4  ;;  %650 = vmatprep.subr.bf16.mxu1 %v749_v8  ;;  %v756_v16 = vld [vmem:[#allocation7 + $0x18] sm:$0xff]   ;;  %v758_v18 = vld [vmem:[#allocation7 + $0x10] sm:$0xff]   ;;  %v760_v20 = vld [vmem:[#allocation7 + $0x8] sm:$0xff]  }
  0x51   :  { %v761_v21 = vld [vmem:[#allocation7 + $0x40] sm:$0xff]   ;;  %v763_v23 = vld [vmem:[#allocation9 + $0x38] sm:$0xff]   ;;  %688 = vmatprep.subr.bf16.mxu0 %v918_v24  ;;  %v764_v25 = vld [vmem:[#allocation9 + $0x30] sm:$0xff]  }
  0x52   :  { %v762_v22 = vld [vmem:[#allocation7] sm:$0xff]   ;;  %v765_v26 = vld [vmem:[#allocation9 + $0x28] sm:$0xff]   ;;  %v767_v28 = vld [vmem:[#allocation9 + $0x18] sm:$0xff]  }
  0x53   :  { %612 = vmatmul.mubr.msk.bf16.vlgmr.msra.gmra.mxu0 %vm149_vm0, %v112_v9  ;;  %651 = vmatpush3.bf16.msra.mxu1 %v750_v10  ;;  %v766_v27 = vld [vmem:[#allocation9 + $0x20] sm:$0xff]   ;;  %v117_v32 = vld [vmem:[#allocation6] sm:$0x3]  ;;  %v768_v46 = vld [vmem:[#allocation9 + $0x10] sm:$0xff]  }
  0x54   :  { %652 = vmatprep.subr.bf16.mxu1 %v751_v11  ;;  %689 = vmatpush3.bf16.msra.mxu0 %v763_v23  ;;  %v122_v34 = vrot.slane %v117_v32, %v121_v31  ;;  %v126_v35 = vrot.slane %v117_v32, %v125_v33  ;;  %v769_v47 = vld [vmem:[#allocation9 + $0x8] sm:$0xff]   ;;  %v770_v48 = vld [vmem:[#allocation9] sm:$0xff]   ;;  %v771_v49 = vld [vmem:[#allocation10 + $0x38] sm:$0xff]  }
  0x55   :  { %690 = vmatprep.subr.bf16.mxu0 %v918_v24  ;;  %704 = vmatprep.mubr.msk.bf16.mxu0 %vm919_vm1, %v918_v24  ;;  %v772_v50 = vld [vmem:[#allocation10 + $0x30] sm:$0xff]   ;;  %v773_v51 = vld [vmem:[#allocation10 + $0x28] sm:$0xff]   ;;  %v774_v52 = vld [vmem:[#allocation10 + $0x20] sm:$0xff]  }
  0x56   :  { %v775_v53 = vld [vmem:[#allocation10 + $0x18] sm:$0xff]   ;;  %v776_v54 = vld [vmem:[#allocation10 + $0x10] sm:$0xff]   ;;  %v777_v0 = vld [vmem:[#allocation10 + $0x8] sm:$0xff]  }
  0x57   :  { %653 = vmatpush3.bf16.msra.mxu1 %v752_v12  ;;  %v613_v56 = vld [vmem:[%s1031_s4] ss:$0 sm:$0xff]  ;;  %v778_v1 = vld [vmem:[#allocation10] sm:$0xff]  }
  0x58   :  { %654 = vmatprep.subr.bf16.mxu1 %v753_v13  ;;  %691 = vmatpush3.bf16.msra.mxu0 %v764_v25  ;;  %v630_v2 = vld [vmem:[%s1033_s6] ss:$0 sm:$0xff] }
  0x59   :  { %692 = vmatprep.subr.bf16.mxu0 %v918_v24  ;;  %v639_v10 = vld [vmem:[%s1035_s8] ss:$0 sm:$0xff] }
  0x5b   :  { %655 = vmatpush3.bf16.msra.mxu1 %v754_v14 }
  0x5c   :  { %656 = vmatprep.subr.bf16.mxu1 %v755_v15  ;;  %693 = vmatpush3.bf16.msra.mxu0 %v765_v26 }
  0x5d   :  { %694 = vmatprep.subr.bf16.mxu0 %v918_v24 }
  0x5f   :  { %657 = vmatpush3.bf16.msra.mxu1 %v756_v16 }
  0x60   :  { %658 = vmatprep.subr.bf16.mxu1 %v757_v17  ;;  %695 = vmatpush3.bf16.msra.mxu0 %v766_v27 }
  0x61   :  { %696 = vmatprep.subr.bf16.mxu0 %v918_v24 }
  0x63   :  { %659 = vmatpush3.bf16.msra.mxu1 %v758_v18 }
  0x64   :  { %660 = vmatprep.subr.bf16.mxu1 %v759_v19  ;;  %697 = vmatpush3.bf16.msra.mxu0 %v767_v28 }
  0x65   :  { %698 = vmatprep.subr.bf16.mxu0 %v918_v24 }
  0x67   :  { %661 = vmatpush3.bf16.msra.mxu1 %v760_v20 }
  0x68   :  { %662 = vmatprep.subr.bf16.mxu1 %v761_v21  ;;  %699 = vmatpush3.bf16.msra.mxu0 %v768_v46 }
  0x69   :  { %700 = vmatprep.subr.bf16.mxu0 %v918_v24 }
  0x6b   :  { %663 = vmatpush3.bf16.msra.mxu1 %v762_v22 }
  0x6c   :  { %708 = vmatprep.subr.bf16.mxu1 %v918_v24  ;;  %701 = vmatpush3.bf16.msra.mxu0 %v769_v47 }
  0x6d   :  { %702 = vmatprep.subr.bf16.mxu0 %v918_v24 }
  0x70   :  { %703 = vmatpush3.bf16.msra.mxu0 %v770_v48 }
 0x113   :  { %v187_v36 = vpop.f32.mrf.mxu0 }
 0x114   :  { %v188_v37 = vadd.f32 %v187_v36, %v122_v34 }
 0x115   :  { %v189_v38 = vpop.f32.mrf.mxu0 }
 0x116   :  { %v190_v39 = vadd.f32 %v189_v38, %v126_v35  ;;  %v194_v40 = vmax.f32 %v188_v37, 0.0 }
 0x117   :  { %v191_v41 = vpop.f32.mrf.mxu0 }
 0x118   :  { %v195_v42 = vmax.f32 %v190_v39, 0.0  ;;  %v196_v45 = vpack.c.bf16 %v194_v40, %v194_v40 }
 0x119   :  { %v192_v43 = vpop.f32.mrf.mxu0 }
 0x11a   :  { %v197_v44 = vpack.c.bf16 %v195_v42, %v195_v42 }
 0x11c   :  { %365 = vmatprep.mubr.bf16.mxu1 %v197_v44 }
 0x11d   :  { %366 = vmatmul.mubr.bf16.vlgmr.msra.gmra.mxu1 %v196_v45 }
 0x11e   :  { %724 = vmatprep.mubr.msk.bf16.mxu1 %vm919_vm1, %v918_v24  ;;  %709 = vmatpush3.bf16.msra.mxu1 %v771_v49 }
 0x11f   :  { %710 = vmatprep.subr.bf16.mxu1 %v918_v24 }
 0x122   :  { %711 = vmatpush3.bf16.msra.mxu1 %v772_v50 }
 0x123   :  { %712 = vmatprep.subr.bf16.mxu1 %v918_v24 }
 0x126   :  { %713 = vmatpush3.bf16.msra.mxu1 %v773_v51 }
 0x127   :  { %714 = vmatprep.subr.bf16.mxu1 %v918_v24 }
 0x12a   :  { %715 = vmatpush3.bf16.msra.mxu1 %v774_v52 }
 0x12b   :  { %716 = vmatprep.subr.bf16.mxu1 %v918_v24 }
 0x12e   :  { %717 = vmatpush3.bf16.msra.mxu1 %v775_v53 }
 0x12f   :  { %718 = vmatprep.subr.bf16.mxu1 %v918_v24 }
 0x132   :  { %719 = vmatpush3.bf16.msra.mxu1 %v776_v54 }
 0x133   :  { %720 = vmatprep.subr.bf16.mxu1 %v918_v24 }
 0x136   :  { %721 = vmatpush3.bf16.msra.mxu1 %v777_v0 }
 0x137   :  { %722 = vmatprep.subr.bf16.mxu1 %v918_v24 }
 0x13a   :  { %723 = vmatpush3.bf16.msra.mxu1 %v778_v1 }
 0x1dd   :  { %v664_v55 = vpop.f32.mrf.mxu1 }
 0x1df   :  { %v665_v57 = vpop.f32.mrf.mxu1 }
 0x1e0   :  { %v666_v58 = vadd.f32 %v665_v57, %v664_v55 }
 0x1e1   :  { %v667_v59 = vpop.f32.mrf.mxu1 }
 0x1e2   :  { %v368_v60 = vadd.f32 %v666_v58, %v613_v56 }
 0x1e3   :  { %v668_v61 = vpop.f32.mrf.mxu1 }
 0x1e4   :  { %v373_v62 = vmax.f32 %v368_v60, 0.0 }
 0x1e6   :  { %v374_v63 = vpack.c.bf16 %v373_v62, %v373_v62 }
 0x1e8   :  { %705 = vmatmul.mubr.bf16.vlgmr.msra.gmra.mxu0 %v374_v63 }
 0x2a8   :  { %v480_v3 = vpop.f32.mrf.mxu0 }
 0x2a9   :  { %v481_v4 = vadd.f32 %v630_v2, %v480_v3 }
 0x2aa   :  { %v706_v5 = vpop.f32.mrf.mxu0 }
 0x2ab   :  { %v486_v6 = vmax.f32 %v481_v4, 0.0 }
 0x2ac   :  { %v483_v7 = vpop.f32.mrf.mxu0 }
 0x2ad   :  { %v487_v8 = vpack.c.bf16 %v486_v6, %v486_v6 }
 0x2ae   :  { %v707_v9 = vpop.f32.mrf.mxu0 }
 0x2af   :  { %725 = vmatmul.mubr.bf16.vlgmr.msra.gmra.mxu1 %v487_v8 }
 0x36f   :  { %v593_v11 = vpop.f32.mrf.mxu1 }
 0x370   :  { %v594_v12 = vadd.f32 %v639_v10, %v593_v11 }
 0x371   :  { %v726_v13 = vpop.f32.mrf.mxu1 }
 0x372   :  { %599 = vst [vmem:[%s1036_s9] sm:$0xff] %v594_v12 }
 0x373   :  { %v596_v14 = vpop.f32.mrf.mxu1 }
 0x375   :  { %v727_v15 = vpop.f32.mrf.mxu1 }
 0x376   :  { %604 = vsyncpa [#allocation3], 1 }
 0x377   :  { %605 = vsyncpa [#allocation5], 1 }
 0x378   :  { %606 = vsyncpa [#allocation8], 1 }
 0x379   :  { %607 = vsyncpa [#allocation11], 1 }

</bundles_post_ra>
